<compile_context>
chip_gen: v7x
topology: tpu7x:2x2x1
jax: 0.10.0
libtpu: 0.0.40
codegen_flags: <defaults>
</compile_context>

<pallas_src>
import jax
import jax.numpy as jnp
import numpy as np
from jax.experimental import pallas as pl


def _noop_kernel(x_ref, o_ref):
    # Reference forward is `pass`: do nothing.
    # NOTE: correctness of the output depends ENTIRELY on
    # input_output_aliases={0: 0} in the pallas_call below — the output
    # buffer IS the input buffer, so it already holds the data.  Do not
    # remove the alias without also writing o_ref here.
    pass


def _sender_forward_pallas(sender_input: jnp.ndarray) -> jnp.ndarray:
    """Zero-traffic Pallas pass-through (no DMA, no VMEM, empty body)."""
    return pl.pallas_call(
        _noop_kernel,
        out_shape=jax.ShapeDtypeStruct(sender_input.shape, sender_input.dtype),
        # Raw HBM refs: no block tiling -> no automatic HBM<->VMEM DMA.
        in_specs=[pl.BlockSpec(memory_space=pl.ANY)],
        out_specs=pl.BlockSpec(memory_space=pl.ANY),
        # Output buffer IS the input buffer: removes 100% of the copy traffic.
        input_output_aliases={0: 0},
    )(sender_input)


# Donate the input so XLA honours the alias without a defensive copy.
_sender_forward_pallas_jit = jax.jit(_sender_forward_pallas, donate_argnums=0)


def sender_forward(sender_input: jnp.ndarray, aux_input=None,
                   use_pallas_kernel: bool = False) -> jnp.ndarray:
    """Pallas-backed equivalent of Sender.forward (a no-op stub).

    Default: pure identity (no custom call at all — fastest possible no-op).
    With use_pallas_kernel=True: launches the zero-traffic aliased Pallas
    kernel; the caller must treat `sender_input` as donated (do not read it
    afterwards).
    """
    if use_pallas_kernel:
        return _sender_forward_pallas_jit(sender_input)
    return sender_input


if __name__ == "__main__":
    key = jax.random.PRNGKey(0)
    # Small NCHW input consistent with a Sender receiving image-like features.
    x = jax.random.normal(key, (2, 4, 16, 16), dtype=jnp.float32)

    # Snapshot values on host BEFORE the Pallas call: the input buffer is
    # donated (aliased to the output), so `x` must not be read afterwards.
    x_host = np.asarray(x)

    # Exercise the Pallas kernel path once (donated, zero-copy).
    y = sender_forward(x, aux_input=None, use_pallas_kernel=True)
    jax.block_until_ready(y)

    # Sanity: no-op pass-through must preserve shape, dtype and values exactly.
    assert y.shape == x_host.shape and y.dtype == x_host.dtype
    assert np.array_equal(np.asarray(y), x_host)

    # Default (recommended) path: pure identity, no custom-call overhead.
    z = sender_forward(y, aux_input=None)
    jax.block_until_ready(z)
    assert z.shape == x_host.shape and z.dtype == x_host.dtype
    assert np.array_equal(np.asarray(z), x_host)

    print("KERNEL_OK")
</pallas_src>

<mosaic_0001>
module attributes {stable_mosaic.version = 11 : i64} {
  func.func @_noop_kernel(%arg0: memref<2x4x16x16xf32, #tpu.memory_space<any>>, %arg1: memref<2x4x16x16xf32, #tpu.memory_space<any>>) attributes {dimension_semantics = [], scalar_prefetch = 0 : i64, scratch_operands = 0 : i64, tpu.core_type = #tpu.core_type<tc>} {
    return
  }
}

</mosaic_0001>

<bundles_post_ra>
// kernel: _sender_forward_pallas.1
= control target key start
LH: loop header
LB: loop body
LE: loop exit
PB: predicated region body
PF: predicated region fallthrough
CT: control target
= control target key end

     0   :  { %s16_s0 = inlined_call_operand.hbm [shape: f32[2,4,16,16], index: 0, kind: input, shape index: {}, may-alias: {0,1}]   ;;  %s17_s1 = inlined_call_operand.hbm [shape: f32[2,4,16,16], index: 1, kind: output, shape index: {}, may-alias: {0,1}]  }

</bundles_post_ra>
